<compile_context>
chip_gen: v7x
topology: tpu7x:2x2x1
jax: 0.10.0
libtpu: 0.0.40
codegen_flags: <defaults>
</compile_context>

<pallas_src>
import functools

import jax
import jax.numpy as jnp
from jax.experimental import pallas as pl
from jax.experimental.pallas import tpu as pltpu


def _round_up(x, m):
    return ((x + m - 1) // m) * m


def _make_kernel(B, W, H, tb):
    """Builds the batch-tiled kernel. B/W/H are true (unpadded) sizes."""
    inv_bw = 1.0 / float(B * W)
    inv_bh = 1.0 / float(B * H)

    def kernel(px_ref, py_ref, tgt_ref, out_ref, acc_ref):
        i = pl.program_id(0)

        @pl.when(i == 0)
        def _init():
            acc_ref[0] = jnp.float32(0.0)

        # Cast inside the kernel: inputs arrive in their native dtype.
        px = px_ref[...].astype(jnp.float32)  # (tb, W)
        py = py_ref[...].astype(jnp.float32)  # (tb, H)

        # Clamp targets to valid range (matches torch.clamp in the module).
        tx = jnp.clip(tgt_ref[:, 0:1], 0, W - 1)  # (tb, 1) int32
        ty = jnp.clip(tgt_ref[:, 1:2], 0, H - 1)  # (tb, 1) int32

        # Valid-row mask for batch padding (padded rows have p == 0).
        row = i * tb + jax.lax.broadcasted_iota(jnp.int32, (tb, 1), 0)
        valid = (row < B).astype(jnp.float32)  # (tb, 1)

        neg100 = jnp.float32(-100.0)

        # Single EUP pass per tensor: clamped log(1 - p) for every element.
        l1mp_x = jnp.maximum(jnp.log1p(-px), neg100)  # (tb, W)
        l1mp_y = jnp.maximum(jnp.log1p(-py), neg100)  # (tb, H)

        # Boolean target masks (no float one-hot materialized).
        col_x = jax.lax.broadcasted_iota(jnp.int32, (tb, W), 1)
        col_y = jax.lax.broadcasted_iota(jnp.int32, (tb, H), 1)
        hit_x = col_x == tx
        hit_y = col_y == ty

        # Target probability & its clamped log(1-p) via masked row-reduce (XLU).
        p_tx = jnp.sum(jnp.where(hit_x, px, 0.0), axis=1, keepdims=True)      # (tb,1)
        p_ty = jnp.sum(jnp.where(hit_y, py, 0.0), axis=1, keepdims=True)      # (tb,1)
        l1mp_tx = jnp.sum(jnp.where(hit_x, l1mp_x, 0.0), axis=1, keepdims=True)
        l1mp_ty = jnp.sum(jnp.where(hit_y, l1mp_y, 0.0), axis=1, keepdims=True)

        # Only tb logs of p (instead of tb*W): the one-hot decomposition.
        log_p_tx = jnp.maximum(jnp.log(p_tx), neg100)  # (tb, 1)
        log_p_ty = jnp.maximum(jnp.log(p_ty), neg100)  # (tb, 1)

        # loss = -sum(clamp(log1p(-p)))/N + sum_b(clamp(log1p(-p_t)) - clamp(log p_t))/N
        dense = inv_bw * jnp.sum(l1mp_x) + inv_bh * jnp.sum(l1mp_y)
        corr = (inv_bw * jnp.sum(valid * (l1mp_tx - log_p_tx))
                + inv_bh * jnp.sum(valid * (l1mp_ty - log_p_ty)))

        acc_ref[0] += corr - dense
        out_ref[0, 0] = acc_ref[0]

    return kernel


@functools.partial(jax.jit, static_argnames=())
def _identity(x):  # small helper to keep wrapper jit-friendly if desired
    return x


def heatmap_ball_detection_loss(output, target_ball_position, visibility=None):
    """JAX wrapper mirroring Heatmap_Ball_Detection_Loss.forward.

    output: tuple (pred_x [B, W], pred_y [B, H]) of probabilities (any float dtype).
    target_ball_position: [B, 2] (x, y) coordinates (any numeric dtype).
    visibility: unused (kept for signature parity with the PyTorch module).
    """
    pred_x, pred_y = output
    B, W = pred_x.shape
    _, H = pred_y.shape
    # NOTE: no f32 cast here — predictions stay in native dtype (cast in-kernel).
    targets = target_ball_position.astype(jnp.int32)

    # Batch tiling: rows are a multiple of 8 (sublane), spatial axis is the full
    # array width (lane). Tile of <=256 rows keeps VMEM use tiny on all chips.
    tb = min(256, _round_up(B, 8))
    bp = _round_up(B, tb)
    if bp != B:
        pad = bp - B
        # Pad predictions with 0.0 (log1p(-0) == 0, contributes nothing); the
        # per-row correction is masked with the valid-row check in the kernel.
        pred_x = jnp.pad(pred_x, ((0, pad), (0, 0)))
        pred_y = jnp.pad(pred_y, ((0, pad), (0, 0)))
        targets = jnp.pad(targets, ((0, pad), (0, 0)))

    grid = (bp // tb,)

    out = pl.pallas_call(
        _make_kernel(B, W, H, tb),
        out_shape=jax.ShapeDtypeStruct((1, 1), jnp.float32),
        grid=grid,
        in_specs=[
            pl.BlockSpec((tb, W), lambda i: (i, 0)),
            pl.BlockSpec((tb, H), lambda i: (i, 0)),
            pl.BlockSpec((tb, 2), lambda i: (i, 0)),
        ],
        out_specs=pl.BlockSpec(memory_space=pltpu.SMEM),
        scratch_shapes=[pltpu.SMEM((1,), jnp.float32)],
        compiler_params=pltpu.CompilerParams(
            # Single reduction axis (scalar accumulator) -> "arbitrary".
            dimension_semantics=("arbitrary",),
            vmem_limit_bytes=32 * 1024 * 1024,
        ),
    )(pred_x, pred_y, targets)
    return out[0, 0]


def _reference_loss(pred_x, pred_y, target):
    """Pure-JAX reference mirroring torch.nn.BCELoss on one-hot targets."""
    B, W = pred_x.shape
    _, H = pred_y.shape
    pred_x = pred_x.astype(jnp.float32)
    pred_y = pred_y.astype(jnp.float32)
    tx = jnp.clip(target[:, 0].astype(jnp.int32), 0, W - 1)
    ty = jnp.clip(target[:, 1].astype(jnp.int32), 0, H - 1)
    tx_oh = jax.nn.one_hot(tx, W, dtype=jnp.float32)
    ty_oh = jax.nn.one_hot(ty, H, dtype=jnp.float32)

    def bce(p, t):
        lp = jnp.maximum(jnp.log(p), -100.0)
        l1mp = jnp.maximum(jnp.log(1.0 - p), -100.0)
        return jnp.mean(-(t * lp + (1.0 - t) * l1mp))

    return bce(pred_x, tx_oh) + bce(pred_y, ty_oh)


if __name__ == "__main__":
    key = jax.random.PRNGKey(0)
    k1, k2, k3, k4 = jax.random.split(key, 4)

    B, W, H = 4, 64, 48  # small shapes: batch=4, width=64, height=48

    # BCELoss expects probabilities in [0, 1]: use sigmoid of random logits.
    pred_x = jax.nn.sigmoid(jax.random.normal(k1, (B, W), dtype=jnp.float32))
    pred_y = jax.nn.sigmoid(jax.random.normal(k2, (B, H), dtype=jnp.float32))

    # Integer ball positions; include out-of-range values to exercise the clamp.
    target_x = jax.random.randint(k3, (B, 1), minval=-3, maxval=W + 3)
    target_y = jax.random.randint(k4, (B, 1), minval=-3, maxval=H + 3)
    target_ball_position = jnp.concatenate([target_x, target_y], axis=1)

    # Visibility is accepted (as in the PyTorch module) but unused.
    visibility = jnp.ones((B,), dtype=jnp.float32)

    loss = heatmap_ball_detection_loss(
        (pred_x, pred_y), target_ball_position, visibility
    )
    loss = jax.block_until_ready(loss)

    ref = _reference_loss(pred_x, pred_y, target_ball_position)
    assert jnp.allclose(loss, ref, rtol=1e-4, atol=1e-5), (loss, ref)

    print("KERNEL_OK")
</pallas_src>

<mosaic_0001>
module attributes {stable_mosaic.version = 11 : i64} {
  func.func @kernel(%arg0: i32, %arg1: memref<8x64xf32, #tpu.memory_space<vmem>>, %arg2: memref<8x48xf32, #tpu.memory_space<vmem>>, %arg3: memref<8x2xi32, #tpu.memory_space<vmem>>, %arg4: memref<1x1xf32, #tpu.memory_space<smem>>, %arg5: memref<1xf32, #tpu.memory_space<smem>>) attributes {dimension_semantics = [#tpu.dimension_semantics<arbitrary>], iteration_bounds = array<i64: 1>, scalar_prefetch = 0 : i64, scratch_operands = 1 : i64, tpu.core_type = #tpu.core_type<tc>, window_params = [{transform_indices = @transform_0, window_bounds = array<i64: 8, 64>}, {transform_indices = @transform_1, window_bounds = array<i64: 8, 48>}, {transform_indices = @transform_2, window_bounds = array<i64: 8, 2>}, {transform_indices = @transform_3, window_bounds = array<i64: 1, 1>}]} {
    %c0_i32 = arith.constant 0 : i32
    %0 = arith.cmpi eq, %arg0, %c0_i32 : i32
    %1 = arith.extui %0 : i1 to i32
    %c0_i32_0 = arith.constant 0 : i32
    %2 = arith.cmpi ne, %1, %c0_i32_0 : i32
    scf.if %2 {
      %cst_35 = arith.constant 0.000000e+00 : f32
      %c0_36 = arith.constant 0 : index
      %93 = memref.load %arg5[%c0_36] : memref<1xf32, #tpu.memory_space<smem>>
      memref.store %cst_35, %arg5[%c0_36] : memref<1xf32, #tpu.memory_space<smem>>
    } else {
    }
    %c0 = arith.constant 0 : index
    %c0_1 = arith.constant 0 : index
    %3 = vector.load %arg1[%c0, %c0_1] : memref<8x64xf32, #tpu.memory_space<vmem>>, vector<8x64xf32>
    %c0_2 = arith.constant 0 : index
    %c0_3 = arith.constant 0 : index
    %4 = vector.load %arg2[%c0_2, %c0_3] : memref<8x48xf32, #tpu.memory_space<vmem>>, vector<8x48xf32>
    %c0_4 = arith.constant 0 : index
    %c0_5 = arith.constant 0 : index
    %5 = vector.load %arg3[%c0_4, %c0_5] : memref<8x2xi32, #tpu.memory_space<vmem>>, vector<8x1xi32>
    %c0_i32_6 = arith.constant 0 : i32
    %c63_i32 = arith.constant 63 : i32
    %6 = vector.broadcast %c0_i32_6 : i32 to vector<8x1xi32>
    %7 = arith.maxsi %6, %5 : vector<8x1xi32>
    %8 = vector.broadcast %c63_i32 : i32 to vector<8x1xi32>
    %9 = arith.minsi %8, %7 : vector<8x1xi32>
    %c0_7 = arith.constant 0 : index
    %c1 = arith.constant 1 : index
    %10 = vector.load %arg3[%c0_7, %c1] : memref<8x2xi32, #tpu.memory_space<vmem>>, vector<8x1xi32>
    %c0_i32_8 = arith.constant 0 : i32
    %c47_i32 = arith.constant 47 : i32
    %11 = vector.broadcast %c0_i32_8 : i32 to vector<8x1xi32>
    %12 = arith.maxsi %11, %10 : vector<8x1xi32>
    %13 = vector.broadcast %c47_i32 : i32 to vector<8x1xi32>
    %14 = arith.minsi %13, %12 : vector<8x1xi32>
    %c8_i32 = arith.constant 8 : i32
    %15 = arith.muli %arg0, %c8_i32 : i32
    %16 = tpu.iota {dimensions = array<i32: 0>} : vector<8x1xi32>
    %17 = vector.broadcast %15 : i32 to vector<8x1xi32>
    %18 = arith.addi %17, %16 : vector<8x1xi32>
    %c4_i32 = arith.constant 4 : i32
    %19 = vector.broadcast %c4_i32 : i32 to vector<8x1xi32>
    %20 = arith.cmpi slt, %18, %19 : vector<8x1xi32>
    %21 = arith.extui %20 : vector<8x1xi1> to vector<8x1xi32>
    %22 = arith.sitofp %21 : vector<8x1xi32> to vector<8x1xf32>
    %cst = arith.constant 0.000000e+00 : f32
    %23 = vector.broadcast %cst : f32 to vector<8x64xf32>
    %24 = arith.subf %23, %3 : vector<8x64xf32>
    %25 = math.log1p %24 : vector<8x64xf32>
    %cst_9 = arith.constant -1.000000e+02 : f32
    %26 = vector.broadcast %cst_9 : f32 to vector<8x64xf32>
    %27 = arith.maximumf %25, %26 : vector<8x64xf32>
    %cst_10 = arith.constant 0.000000e+00 : f32
    %28 = vector.broadcast %cst_10 : f32 to vector<8x48xf32>
    %29 = arith.subf %28, %4 : vector<8x48xf32>
    %30 = math.log1p %29 : vector<8x48xf32>
    %cst_11 = arith.constant -1.000000e+02 : f32
    %31 = vector.broadcast %cst_11 : f32 to vector<8x48xf32>
    %32 = arith.maximumf %30, %31 : vector<8x48xf32>
    %33 = tpu.iota {dimensions = array<i32: 1>} : vector<8x64xi32>
    %34 = tpu.iota {dimensions = array<i32: 1>} : vector<8x48xi32>
    %35 = vector.broadcast %9 : vector<8x1xi32> to vector<8x64xi32>
    %36 = arith.cmpi eq, %33, %35 : vector<8x64xi32>
    %37 = vector.broadcast %14 : vector<8x1xi32> to vector<8x48xi32>
    %38 = arith.cmpi eq, %34, %37 : vector<8x48xi32>
    %cst_12 = arith.constant 0.000000e+00 : f32
    %39 = vector.broadcast %cst_12 : f32 to vector<8x64xf32>
    %40 = arith.select %36, %3, %39 : vector<8x64xi1>, vector<8x64xf32>
    %cst_13 = arith.constant dense<0.000000e+00> : vector<8xf32>
    %41 = vector.multi_reduction <add>, %40, %cst_13 [1] : vector<8x64xf32> to vector<8xf32>
    %42 = vector.shape_cast %41 : vector<8xf32> to vector<8x1xf32>
    %cst_14 = arith.constant 0.000000e+00 : f32
    %43 = vector.broadcast %cst_14 : f32 to vector<8x48xf32>
    %44 = arith.select %38, %4, %43 : vector<8x48xi1>, vector<8x48xf32>
    %cst_15 = arith.constant dense<0.000000e+00> : vector<8xf32>
    %45 = vector.multi_reduction <add>, %44, %cst_15 [1] : vector<8x48xf32> to vector<8xf32>
    %46 = vector.shape_cast %45 : vector<8xf32> to vector<8x1xf32>
    %cst_16 = arith.constant 0.000000e+00 : f32
    %47 = vector.broadcast %cst_16 : f32 to vector<8x64xf32>
    %48 = arith.select %36, %27, %47 : vector<8x64xi1>, vector<8x64xf32>
    %cst_17 = arith.constant dense<0.000000e+00> : vector<8xf32>
    %49 = vector.multi_reduction <add>, %48, %cst_17 [1] : vector<8x64xf32> to vector<8xf32>
    %50 = vector.shape_cast %49 : vector<8xf32> to vector<8x1xf32>
    %cst_18 = arith.constant 0.000000e+00 : f32
    %51 = vector.broadcast %cst_18 : f32 to vector<8x48xf32>
    %52 = arith.select %38, %32, %51 : vector<8x48xi1>, vector<8x48xf32>
    %cst_19 = arith.constant dense<0.000000e+00> : vector<8xf32>
    %53 = vector.multi_reduction <add>, %52, %cst_19 [1] : vector<8x48xf32> to vector<8xf32>
    %54 = vector.shape_cast %53 : vector<8xf32> to vector<8x1xf32>
    %55 = math.log %42 : vector<8x1xf32>
    %cst_20 = arith.constant -1.000000e+02 : f32
    %56 = vector.broadcast %cst_20 : f32 to vector<8x1xf32>
    %57 = arith.maximumf %55, %56 : vector<8x1xf32>
    %58 = math.log %46 : vector<8x1xf32>
    %cst_21 = arith.constant -1.000000e+02 : f32
    %59 = vector.broadcast %cst_21 : f32 to vector<8x1xf32>
    %60 = arith.maximumf %58, %59 : vector<8x1xf32>
    %61 = vector.shape_cast %27 : vector<8x64xf32> to vector<1x8x64xf32>
    %cst_22 = arith.constant dense<0.000000e+00> : vector<1xf32>
    %62 = vector.multi_reduction <add>, %61, %cst_22 [1, 2] : vector<1x8x64xf32> to vector<1xf32>
    %63 = vector.shape_cast %62 : vector<1xf32> to vector<1x1x1xf32>
    %64 = vector.extract %63[0, 0, 0] : f32 from vector<1x1x1xf32>
    %cst_23 = arith.constant 3.906250e-03 : f32
    %65 = arith.mulf %cst_23, %64 : f32
    %66 = vector.shape_cast %32 : vector<8x48xf32> to vector<1x8x48xf32>
    %cst_24 = arith.constant dense<0.000000e+00> : vector<1xf32>
    %67 = vector.multi_reduction <add>, %66, %cst_24 [1, 2] : vector<1x8x48xf32> to vector<1xf32>
    %68 = vector.shape_cast %67 : vector<1xf32> to vector<1x1x1xf32>
    %69 = vector.extract %68[0, 0, 0] : f32 from vector<1x1x1xf32>
    %cst_25 = arith.constant 0.00520833349 : f32
    %70 = arith.mulf %cst_25, %69 : f32
    %71 = arith.addf %65, %70 : f32
    %72 = arith.subf %50, %57 : vector<8x1xf32>
    %73 = arith.mulf %22, %72 : vector<8x1xf32>
    %74 = vector.shape_cast %73 : vector<8x1xf32> to vector<1x8x1xf32>
    %cst_26 = arith.constant dense<0.000000e+00> : vector<1xf32>
    %75 = vector.multi_reduction <add>, %74, %cst_26 [1, 2] : vector<1x8x1xf32> to vector<1xf32>
    %76 = vector.shape_cast %75 : vector<1xf32> to vector<1x1x1xf32>
    %77 = vector.extract %76[0, 0, 0] : f32 from vector<1x1x1xf32>
    %cst_27 = arith.constant 3.906250e-03 : f32
    %78 = arith.mulf %cst_27, %77 : f32
    %79 = arith.subf %54, %60 : vector<8x1xf32>
    %80 = arith.mulf %22, %79 : vector<8x1xf32>
    %81 = vector.shape_cast %80 : vector<8x1xf32> to vector<1x8x1xf32>
    %cst_28 = arith.constant dense<0.000000e+00> : vector<1xf32>
    %82 = vector.multi_reduction <add>, %81, %cst_28 [1, 2] : vector<1x8x1xf32> to vector<1xf32>
    %83 = vector.shape_cast %82 : vector<1xf32> to vector<1x1x1xf32>
    %84 = vector.extract %83[0, 0, 0] : f32 from vector<1x1x1xf32>
    %cst_29 = arith.constant 0.00520833349 : f32
    %85 = arith.mulf %cst_29, %84 : f32
    %86 = arith.addf %78, %85 : f32
    %c0_30 = arith.constant 0 : index
    %87 = memref.load %arg5[%c0_30] : memref<1xf32, #tpu.memory_space<smem>>
    %88 = arith.subf %86, %71 : f32
    %89 = arith.addf %87, %88 : f32
    %c0_31 = arith.constant 0 : index
    %90 = memref.load %arg5[%c0_31] : memref<1xf32, #tpu.memory_space<smem>>
    memref.store %89, %arg5[%c0_31] : memref<1xf32, #tpu.memory_space<smem>>
    %c0_32 = arith.constant 0 : index
    %91 = memref.load %arg5[%c0_32] : memref<1xf32, #tpu.memory_space<smem>>
    %c0_33 = arith.constant 0 : index
    %c0_34 = arith.constant 0 : index
    %92 = memref.load %arg4[%c0_33, %c0_34] : memref<1x1xf32, #tpu.memory_space<smem>>
    memref.store %91, %arg4[%c0_33, %c0_34] : memref<1x1xf32, #tpu.memory_space<smem>>
    return
  }
  func.func @transform_0(%arg0: i32) -> (i32, i32) {
    %c0_i32 = arith.constant 0 : i32
    %c0_i32_0 = arith.constant 0 : i32
    return %arg0, %c0_i32 : i32, i32
  }
  func.func @transform_1(%arg0: i32) -> (i32, i32) {
    %c0_i32 = arith.constant 0 : i32
    %c0_i32_0 = arith.constant 0 : i32
    return %arg0, %c0_i32 : i32, i32
  }
  func.func @transform_2(%arg0: i32) -> (i32, i32) {
    %c0_i32 = arith.constant 0 : i32
    %c0_i32_0 = arith.constant 0 : i32
    return %arg0, %c0_i32 : i32, i32
  }
  func.func @transform_3(%arg0: i32) -> (i32, i32) {
    %c0_i32 = arith.constant 0 : i32
    %c0_i32_0 = arith.constant 0 : i32
    %c0_i32_1 = arith.constant 0 : i32
    return %c0_i32, %c0_i32_0 : i32, i32
  }
}

</mosaic_0001>

<bundles_post_ra>
// kernel: tpu_custom_call.1
= control target key start
LH: loop header
LB: loop body
LE: loop exit
PB: predicated region body
PF: predicated region fallthrough
CT: control target
= control target key end

     0   :  { %8 = vsyncpa [#allocation4], 0  ;;  %s299_s0 = inlined_call_operand.vmem [shape: f32[8,64], index: 0, kind: input, shape index: {}]   ;;  %s300_s1 = inlined_call_operand.hbm [shape: f32[8,48], index: 1, kind: input, shape index: {}]   ;;  %s301_s2 = inlined_call_operand.vmem [shape: s32[8,2], index: 2, kind: input, shape index: {}]   ;;  %s302_s3 = inlined_call_operand.hbm [shape: f32[1,1], index: 3, kind: output, shape index: {}]  }
   0x1   :  { %9 = vsyncpa [#allocation5], 0  ;;  %s239_s12 = smov [#allocation3]   ;;  %s203_s16 = scalar_lea.hbm %s300_s1, 128 }
   0x2   :  { %s18_s13 = sshll.u32 %s239_s12, 4  ;;  %p204_p0 = scmp.ne.s32.totalorder %s300_s1, %s203_s16  ;;  %s19_s13 = int_to_ptr.vmem [resolvable:$true] %s18_s13 }
   0x3   :  { %p207_p1 = scmp.lt.u32.totalorder %s203_s16, %s300_s1 }
   0x5   :  { %p209_p2 = pnand %p207_p1, %p204_p0 }
   0x7   :  { %212 = shalt.err (!%p209_p2)
}
   0x8   :  { %s213_s21 = scalar_lea.vmem %s19_s13, 128  ;;  %p218_p4 = scmp.lt.s32.totalorder %s19_s13, %s19_s13 }
   0x9   :  { %p214_p3 = scmp.ne.s32.totalorder %s19_s13, %s213_s21  ;;  %p219_p5 = scmp.lt.s32.totalorder %s213_s21, %s213_s21 }
   0xb   :  { %p220_p6 = por %p219_p5, %p218_p4 }
   0xd   :  { %p221_p7 = pnand %p220_p6, %p214_p3 }
   0xf   :  { %224 = shalt.err (!%p221_p7)
}
  0x10   :  { %21 = dma.hbm_to_vmem [thread:$0]  %s300_s1, 128, %s19_s13, [#allocation4]  }
  0x11   :  { %235 = dma.done.wait [#allocation4], 128  }
  0x12   :  { %236 = vsyncadd [#allocation4], 4294967168  ;;  %v240_v0 = vmov 0   ;;  %v35_v1 = vld [vmem:[%s301_s2] sm:$0xff]  ;;  %v241_v5 = vmov 1   ;;  %v43_v16 = vlaneseq  ;;  %vm83_vm5 = vcmask 523264  }
  0x13   :  { %193 = vset.pattern.permute.xlu0 %v240_v0  ;;  %vm36_vm0 = vcmp.gt.s32.totalorder %v35_v1, 0  ;;  %v34_v6 = vld [vmem:[#allocation3] sm:$0xff]  ;;  %vm88_vm7 = vcmask 392192   ;;  %v242_v49 = vmov 0.0   ;;  %vm131_vm10 = vcmask 7168   ;;  %s225_s11 = scalar_lea.hbm %s302_s3, 16 }
  0x14   :  { %v37_v2 = vsel %vm36_vm0, %v35_v1, 0  ;;  %v33_v7 = vld [vmem:[%s299_s0] sm:$0xff]  ;;  %v61_v8 = vsub.f32 0.0, %v34_v6  ;;  %v73_v23 = vand.u32 127, %v43_v16  ;;  %v44_v44 = vshrl.u32 %v43_v16, 7  ;;  %p226_p8 = scmp.ne.s32.totalorder %s302_s3, %s225_s11  ;;  %p229_p9 = scmp.lt.u32.totalorder %s225_s11, %s302_s3 }
  0x15   :  { %vm38_vm1 = vcmp.lt.s32.totalorder %v37_v2, 63  ;;  %vm40_vm2 = vcmp.lt.s32.totalorder %v37_v2, 47  ;;  %v50_v9 = vsub.f32 0.0, %v33_v7 }
  0x16   :  { %v39_v3 = vsel %vm38_vm1, %v37_v2, 63  ;;  %v41_v4 = vsel %vm40_vm2, %v37_v2, 47  ;;  %v62_v10 = vadd.f32 1.0, %v61_v8  ;;  %v65_v12 = vmul.f32 -0.5, %v61_v8  ;;  %p231_p10 = pnand %p229_p9, %p226_p8 }
  0x17   :  { %75 = vperm.xlu0 %193, %v39_v3   ;;  %v51_v11 = vadd.f32 1.0, %v50_v9  ;;  %v54_v13 = vmul.f32 -0.5, %v50_v9  ;;  %v68_v17 = vand.u32 2147483647, %v61_v8  ;;  %v57_v20 = vand.u32 2147483647, %v50_v9 }
  0x18   :  { %195 = vlog2.f32 %v62_v10  ;;  %v66_v14 = vadd.f32 1.0, %v65_v12  ;;  %vm47_vm9 = vcmp.lt.s32.totalorder %v44_v44, 4 }
  0x19   :  { %197 = vlog2.f32 %v51_v11  ;;  %v55_v18 = vadd.f32 1.0, %v54_v13  ;;  %vm69_vm3 = vcmp.lt.f32.partialorder %v68_v17, 0.0004427343  ;;  %vm58_vm4 = vcmp.lt.f32.partialorder %v57_v20, 0.0004427343 }
  0x1a   :  { %v67_v22 = vmul.f32 %v66_v14, %v61_v8  ;;  %v179_v50 = vsel %vm47_vm9, 1.0, %v242_v49 }
  0x1b   :  { %194 = vset.pattern.permute.xlu0 %v241_v5  ;;  %v56_v25 = vmul.f32 %v55_v18, %v50_v9 }
  0x1c   :  { %79 = vperm.xlu0 %194, %v41_v4  }
  0x22   :  { %v196_v15 = vpop.eup %195 }
  0x23   :  { %v198_v19 = vpop.eup %197  ;;  %v64_v21 = vmul.f32 0.6931472, %v196_v15 }
  0x24   :  { %v53_v24 = vmul.f32 0.6931472, %v198_v19 }
  0x25   :  { %v70_v27 = vsel %vm69_vm3, %v67_v22, %v64_v21 }
  0x26   :  { %v59_v29 = vsel %vm58_vm4, %v56_v25, %v53_v24  ;;  %v71_v31 = vmax.f32 %v70_v27, -100.0 }
  0x27   :  { %v60_v33 = vmax.f32 %v59_v29, -100.0 }
  0x28   :  { %v117_v41 = vsel %vm88_vm7, %v71_v31, 0.0 }
  0x29   :  { %v106_v40 = vsel %vm83_vm5, %v60_v33, 0.0 }
  0x96   :  { %v76_v26 = vpop.permute.xlu0 %75 }
  0x97   :  { %vm77_vm6 = vcmp.eq.s32.totalorder %v73_v23, %v76_v26 }
  0x98   :  { %v82_v28 = vsel %vm77_vm6, %v33_v7, 0.0  ;;  %v92_v38 = vsel %vm77_vm6, %v60_v33, 0.0 }
  0x99   :  { %v84_v30 = vsel %vm83_vm5, %v82_v28, 0.0  ;;  %v93_v39 = vsel %vm83_vm5, %v92_v38, 0.0 }
  0x9a   :  { %85 = vadd.xlane.f32.xlu1 %v84_v30 }
  0x9b   :  { %v80_v32 = vpop.permute.xlu0 %79 }
  0x9c   :  { %vm81_vm8 = vcmp.eq.s32.totalorder %v73_v23, %v80_v32 }
  0x9d   :  { %v96_v34 = vsel %vm81_vm8, %v71_v31, 0.0  ;;  %v87_v35 = vsel %vm81_vm8, %v34_v6, 0.0 }
  0x9e   :  { %v97_v36 = vsel %vm88_vm7, %v96_v34, 0.0  ;;  %v89_v37 = vsel %vm88_vm7, %v87_v35, 0.0 }
  0x9f   :  { %98 = vadd.xlane.f32.xlu0 %v97_v36  ;;  %90 = vadd.xlane.f32.xlu1 %v89_v37 }
  0xa3   :  { %94 = vadd.xlane.f32.xlu1 %v93_v39 }
  0xa7   :  { %107 = vadd.xlane.f32.xlu1 %v106_v40 }
  0xab   :  { %118 = vadd.xlane.f32.xlu1 %v117_v41 }
 0x127   :  { %v86_v42 = vpop.xlane.xlu1 %85 }
 0x128   :  { %199 = vlog2.f32 %v86_v42 }
 0x12c   :  { %v91_v43 = vpop.xlane.xlu1 %90  ;;  %v99_v59 = vpop.xlane.xlu0 %98 }
 0x12d   :  { %201 = vlog2.f32 %v91_v43 }
 0x130   :  { %v95_v46 = vpop.xlane.xlu1 %94 }
 0x132   :  { %v200_v45 = vpop.eup %199 }
 0x133   :  { %v101_v47 = vmul.f32 0.6931472, %v200_v45 }
 0x134   :  { %v108_v51 = vpop.xlane.xlu1 %107 }
 0x135   :  { %v102_v48 = vmax.f32 %v101_v47, -100.0  ;;  %v109_v54 = vrot.slane %v108_v51, 4 }
 0x137   :  { %v202_v52 = vpop.eup %201  ;;  %v129_v53 = vsub.f32 %v95_v46, %v102_v48  ;;  %v110_v57 = vadd.f32 %v109_v54, %v108_v51 }
 0x138   :  { %v104_v55 = vmul.f32 0.6931472, %v202_v52  ;;  %v119_v63 = vpop.xlane.xlu1 %118 }
 0x139   :  { %v130_v56 = vmul.f32 %v179_v50, %v129_v53  ;;  %v111_v61 = vrot.slane %v110_v57, 2  ;;  %v120_v0 = vrot.slane %v119_v63, 4 }
 0x13a   :  { %v105_v58 = vmax.f32 %v104_v55, -100.0 }
 0x13b   :  { %v132_v60 = vsel %vm131_vm10, %v130_v56, 0.0  ;;  %v112_v1 = vadd.f32 %v111_v61, %v110_v57  ;;  %v121_v3 = vadd.f32 %v120_v0, %v119_v63 }
 0x13c   :  { %133 = vadd.xlane.f32.xlu1 %v132_v60  ;;  %v143_v62 = vsub.f32 %v99_v59, %v105_v58 }
 0x13d   :  { %v113_v4 = vrot.slane %v112_v1, 1  ;;  %v122_v6 = vrot.slane %v121_v3, 2 }
 0x13e   :  { %v144_v2 = vmul.f32 %v179_v50, %v143_v62 }
 0x13f   :  { %v114_v7 = vadd.f32 %v113_v4, %v112_v1  ;;  %v123_v8 = vadd.f32 %v122_v6, %v121_v3 }
 0x140   :  { %v145_v5 = vsel %vm131_vm10, %v144_v2, 0.0 }
 0x141   :  { %146 = vadd.xlane.f32.xlu1 %v145_v5  ;;  %180 = vpush %v114_v7  ;;  %v124_v9 = vrot.slane %v123_v8, 1 }
 0x143   :  { %v125_v10 = vadd.f32 %v124_v9, %v123_v8 }
 0x145   :  { %182 = vpush %v125_v10 }
 0x172   :  { %s181_s0 = spop %180 }
 0x173   :  { %s116_s27 = smul.f32 0.00390625, %s181_s0 }
 0x176   :  { %s183_s2 = spop %182 }
 0x177   :  { %s127_s29 = smul.f32 0.0052083335, %s183_s2 }
 0x179   :  { %s128_s6 = sadd.f32 %s127_s29, %s116_s27 }
 0x1c9   :  { %v134_v11 = vpop.xlane.xlu1 %133 }
 0x1ca   :  { %v135_v12 = vrot.slane %v134_v11, 4 }
 0x1cc   :  { %v136_v13 = vadd.f32 %v135_v12, %v134_v11 }
 0x1ce   :  { %v137_v14 = vrot.slane %v136_v13, 2  ;;  %v147_v15 = vpop.xlane.xlu1 %146 }
 0x1cf   :  { %v148_v16 = vrot.slane %v147_v15, 4 }
 0x1d0   :  { %v138_v17 = vadd.f32 %v137_v14, %v136_v13 }
 0x1d1   :  { %v149_v18 = vadd.f32 %v148_v16, %v147_v15 }
 0x1d2   :  { %v139_v19 = vrot.slane %v138_v17, 1 }
 0x1d3   :  { %v150_v20 = vrot.slane %v149_v18, 2 }
 0x1d4   :  { %v140_v21 = vadd.f32 %v139_v19, %v138_v17 }
 0x1d5   :  { %v151_v22 = vadd.f32 %v150_v20, %v149_v18 }
 0x1d6   :  { %184 = vpush %v140_v21 }
 0x1d7   :  { %v152_v23 = vrot.slane %v151_v22, 1 }
 0x1d9   :  { %v153_v24 = vadd.f32 %v152_v23, %v151_v22 }
 0x1db   :  { %186 = vpush %v153_v24 }
 0x207   :  { %s185_s28 = spop %184 }
 0x208   :  { %s142_s30 = smul.f32 0.00390625, %s185_s28 }
 0x20c   :  { %s187_s4 = spop %186 }
 0x20d   :  { %s155_s5 = smul.f32 0.0052083335, %s187_s4 }
 0x20f   :  { %s156_s7 = sadd.f32 %s155_s5, %s142_s30 }
 0x211   :  { %s158_s8 = ssub.f32 %s156_s7, %s128_s6 }
 0x213   :  { %164 = sst [smem:[#allocation6]] %s158_s8 }
 0x214   :  { %234 = shalt.err (!%p231_p10)
}
 0x215   :  { %s243_s16 = smov [#allocation6]  }
 0x216   :  { %172 = dma.smem_to_hbm %s243_s16, 16, %s302_s3, [#allocation5]  }
 0x217   :  { %237 = dma.done.wait [#allocation5], 16  }
 0x218   :  { %238 = vsyncadd [#allocation5], 4294967280 }
 0x219   :  { %176 = sfence }
 0x21a   :  { %177 = vsyncpa [#allocation4], 1 }
 0x21b   :  { %178 = vsyncpa [#allocation5], 1 }

</bundles_post_ra>
